<compile_context>
chip_gen: v6e
topology: v6e:2x2x1
jax: 0.10.0
libtpu: 0.0.40
codegen_flags: <defaults>
</compile_context>

<pallas_src>
import functools

import jax
import jax.numpy as jnp
from jax.experimental import pallas as pl
from jax.experimental.pallas import tpu as pltpu


def _pe_kernel(coords_ref, scale_ref, out_ref, *, num_freq, include_input):
    """Lane-dense PE tile.

    coords_ref: (D, tn) f32     (D on sublanes, N-tile on lanes)
    scale_ref:  (F*D, 1) f32    scale[f*D + d] = bands[f]
    out_ref:    (out_dim, tn)   rows = [coords? | sin(winded) | cos(winded)]
    """
    coords = coords_ref[...]                                   # (D, tn)
    # winded[f*D + d, :] = bands[f] * coords[d, :] — replicate along sublanes
    # then one lane-broadcast VPU multiply; no MXU involved.
    tiled = jnp.concatenate([coords] * num_freq, axis=0)       # (F*D, tn)
    winded = tiled * scale_ref[...]                            # (F*D, tn)

    parts = []
    if include_input:
        parts.append(coords)
    parts.append(jnp.sin(winded))
    parts.append(jnp.cos(winded))
    # Single full-tile, fully lane-dense, unmasked store.
    out_ref[...] = jnp.concatenate(parts, axis=0).astype(out_ref.dtype)


def positional_encoding_t(coords_t, bands, *, include_input=True, tn=16384,
                          out_dtype=jnp.float32):
    """Lane-dense entry point.

    coords_t: [D, N] float32; bands: [F] float32.
    Returns [out_dim, N] with out_dim = (D if include_input else 0) + 2*F*D and
    row order [coords | sin(f-major,d-minor) | cos(...)] — i.e. the transpose
    of the torch module's output.  Consumers should use this layout directly
    (encoded^T is a fine matmul operand) instead of transposing back.
    """
    D, N = coords_t.shape
    F = bands.shape[0]
    out_dim = (D if include_input else 0) + 2 * F * D

    coords_t = coords_t.astype(jnp.float32)
    # scale[f*D + d] = bands[f]
    scale = jnp.repeat(bands.astype(jnp.float32), D).reshape(F * D, 1)

    # Tile along N (the lane axis).  If the whole problem fits in one tile we
    # use the full extent (no 128-divisibility needed); otherwise the tile is
    # a multiple of 128 and pl.cdiv + Pallas' masked writeback handle the
    # ragged tail — no host-side pad/slice.
    if N <= tn:
        tn = N
    else:
        tn = max(128, (min(int(tn), N) // 128) * 128)
    grid = pl.cdiv(N, tn)

    kernel = functools.partial(
        _pe_kernel, num_freq=F, include_input=include_input)

    return pl.pallas_call(
        kernel,
        out_shape=jax.ShapeDtypeStruct((out_dim, N), out_dtype),
        grid=(grid,),
        in_specs=[
            pl.BlockSpec((D, tn), lambda i: (0, i)),
            pl.BlockSpec((F * D, 1), lambda i: (0, 0)),
        ],
        out_specs=pl.BlockSpec((out_dim, tn), lambda i: (0, i)),
        compiler_params=pltpu.CompilerParams(
            dimension_semantics=("parallel",)),
    )(coords_t, scale)


def positional_encoding(coords, bands, *, include_input=True, tn=16384,
                        out_dtype=jnp.float32):
    """Drop-in equivalent of the torch forward: coords [N, D] -> [N, out_dim].

    Internally uses the lane-dense transposed kernel.  The input transpose is
    cheap (12 B/row); the output transpose back to [N, out_dim] exists only for
    torch-layout parity — production consumers should call
    positional_encoding_t and fuse the transpose into the downstream matmul.
    """
    # TODO(synk): expose only the [out_dim, N] layout once consumers are
    # updated; the trailing .T is an extra XLA pass over the large output.
    enc_t = positional_encoding_t(coords.T, bands, include_input=include_input,
                                  tn=tn, out_dtype=out_dtype)
    return enc_t.T


def make_bands(num_freq, max_freq_log2, log_sampling=True):
    """Deterministic parameter init matching the torch module __init__."""
    if log_sampling:
        return (2.0 ** jnp.linspace(0.0, max_freq_log2, num_freq)).astype(jnp.float32)
    return jnp.linspace(1.0, 2.0 ** max_freq_log2, num_freq).astype(jnp.float32)


def positional_encoding_ref(coords, bands, include_input=True):
    """Pure-JAX reference mirroring the torch forward."""
    N = coords.shape[0]
    winded = (coords[:, None, :] * bands[None, :, None]).reshape(N, -1)
    encoded = jnp.concatenate([jnp.sin(winded), jnp.cos(winded)], axis=-1)
    if include_input:
        encoded = jnp.concatenate([coords, encoded], axis=-1)
    return encoded


if __name__ == "__main__":
    # Small shapes consistent with the module: coords [N, input_dim].
    N, input_dim = 64, 3
    num_freq, max_freq_log2 = 4, 3

    key = jax.random.PRNGKey(0)
    coords = jax.random.normal(key, (N, input_dim), dtype=jnp.float32)
    bands = make_bands(num_freq, max_freq_log2, log_sampling=True)

    # Torch-layout wrapper.
    out = jax.block_until_ready(
        positional_encoding(coords, bands, include_input=True))
    ref = positional_encoding_ref(coords, bands, include_input=True)
    assert out.shape == (N, input_dim + 2 * num_freq * input_dim), out.shape
    assert jnp.allclose(out, ref, atol=1e-5, rtol=1e-5), "mismatch vs reference"

    # Lane-dense entry point used directly (what consumers should call).
    out_t = jax.block_until_ready(
        positional_encoding_t(coords.T, bands, include_input=True))
    assert out_t.shape == ref.T.shape, out_t.shape
    assert jnp.allclose(out_t, ref.T, atol=1e-5, rtol=1e-5), "mismatch (transposed)"

    # Ragged multi-tile grid (tn=128 forces 3 tiles with a masked 44-lane
    # tail) and include_input=False.
    coords2 = jax.random.normal(jax.random.PRNGKey(1), (300, input_dim),
                                dtype=jnp.float32)
    out2 = jax.block_until_ready(
        positional_encoding(coords2, bands, include_input=False, tn=128))
    ref2 = positional_encoding_ref(coords2, bands, include_input=False)
    assert out2.shape == ref2.shape, out2.shape
    assert jnp.allclose(out2, ref2, atol=1e-5, rtol=1e-5), "mismatch (ragged)"

    print("KERNEL_OK")
</pallas_src>

<mosaic_0001>
module attributes {stable_mosaic.version = 11 : i64} {
  func.func @_pe_kernel(%arg0: i32, %arg1: memref<3x64xf32, #tpu.memory_space<vmem>>, %arg2: memref<12x1xf32, #tpu.memory_space<vmem>>, %arg3: memref<27x64xf32, #tpu.memory_space<vmem>>) attributes {dimension_semantics = [#tpu.dimension_semantics<parallel>], iteration_bounds = array<i64: 1>, scalar_prefetch = 0 : i64, scratch_operands = 0 : i64, tpu.core_type = #tpu.core_type<tc>, window_params = [{transform_indices = @transform_0, window_bounds = array<i64: 3, 64>}, {pipeline_mode = #tpu.pipeline_mode<synchronous>, transform_indices = @transform_1, window_bounds = array<i64: 12, 1>}, {transform_indices = @transform_2, window_bounds = array<i64: 27, 64>}]} {
    %c0 = arith.constant 0 : index
    %c0_0 = arith.constant 0 : index
    %0 = vector.load %arg1[%c0, %c0_0] : memref<3x64xf32, #tpu.memory_space<vmem>>, vector<3x64xf32>
    %1 = tpu.concatenate %0, %0, %0, %0 in 0 : vector<3x64xf32>, vector<3x64xf32>, vector<3x64xf32>, vector<3x64xf32> -> vector<12x64xf32>
    %c0_1 = arith.constant 0 : index
    %c0_2 = arith.constant 0 : index
    %2 = vector.load %arg2[%c0_1, %c0_2] : memref<12x1xf32, #tpu.memory_space<vmem>>, vector<12x1xf32>
    %3 = vector.broadcast %2 : vector<12x1xf32> to vector<12x64xf32>
    %4 = arith.mulf %1, %3 : vector<12x64xf32>
    %5 = math.sin %4 : vector<12x64xf32>
    %6 = math.cos %4 : vector<12x64xf32>
    %7 = tpu.concatenate %0, %5, %6 in 0 : vector<3x64xf32>, vector<12x64xf32>, vector<12x64xf32> -> vector<27x64xf32>
    %c0_3 = arith.constant 0 : index
    %c0_4 = arith.constant 0 : index
    %8 = vector.load %arg3[%c0_3, %c0_4] : memref<27x64xf32, #tpu.memory_space<vmem>>, vector<27x64xf32>
    tpu.vector_store %arg3[%c0_3, %c0_4], %7 {strides = array<i32>} : memref<27x64xf32, #tpu.memory_space<vmem>>, vector<27x64xf32>,
    return
  }
  func.func @transform_0(%arg0: i32) -> (i32, i32) {
    %c0_i32 = arith.constant 0 : i32
    %c0_i32_0 = arith.constant 0 : i32
    return %c0_i32, %arg0 : i32, i32
  }
  func.func @transform_1(%arg0: i32) -> (i32, i32) {
    %c0_i32 = arith.constant 0 : i32
    %c0_i32_0 = arith.constant 0 : i32
    %c0_i32_1 = arith.constant 0 : i32
    return %c0_i32, %c0_i32_0 : i32, i32
  }
  func.func @transform_2(%arg0: i32) -> (i32, i32) {
    %c0_i32 = arith.constant 0 : i32
    %c0_i32_0 = arith.constant 0 : i32
    return %c0_i32, %arg0 : i32, i32
  }
}

</mosaic_0001>

<bundles_post_ra>
// kernel: tpu_custom_call.1
= control target key start
LH: loop header
LB: loop body
LE: loop exit
PB: predicated region body
PF: predicated region fallthrough
CT: control target
= control target key end

     0   :  { %v559_v1 = vmov 0   ;;  %s673_s0 = inlined_call_operand.vmem [shape: f32[3,64], index: 0, kind: input, shape index: {}]   ;;  %s674_s1 = inlined_call_operand.vmem [shape: f32[12,1], index: 1, kind: input, shape index: {}]   ;;  %s675_s2 = inlined_call_operand.hbm [shape: f32[27,64], index: 2, kind: output, shape index: {}]  }
   0x1   :  { %v26_v0 = vld [vmem:[%s674_s1] sm:$0xff]  ;;  %528 = vset.pattern.permute.xlu0 %v559_v1  ;;  %v27_v2 = vld [vmem:[%s674_s1 + $0x8] sm:$0xf] }
   0x2   :  { %30 = vperm.xlu0 %528, %v26_v0  }
   0x3   :  { %7 = vsyncpa [#allocation3], 0  ;;  %v593_v3 = vld [vmem:[%s673_s0] sm:$0x7]  ;;  %vm20_vm0 = vcmask 1042432   ;;  %vm22_vm1 = vcmask 1045504  }
   0x4   :  { %v14_v4 = vrot.slane %v593_v3, 5  ;;  %v16_v5 = vrot.slane %v593_v3, 2  ;;  %v18_v8 = vrot.slane %v593_v3, 7  ;;  %vm24_vm2 = vcmask 1040384   ;;  %s566_s0 = smov [#allocation2]  }
   0x5   :  { %v560_v30 = vmov 683565275   ;;  %v561_v34 = vmov 2475754826   ;;  %v562_v36 = vmov 2131351028  }
   0x6   :  { %35 = vperm.xlu0 %528, %v27_v2   ;;  %v21_v6 = vsel %vm20_vm0, %v593_v3, %v14_v4  ;;  %v25_v11 = vsel %vm24_vm2, %v16_v5, %v18_v8  ;;  %v563_v38 = vmov 2102212464   ;;  %v564_v40 = vmov 920167782   ;;  %s483_s1 = sshll.u32 %s566_s0, 4  ;;  %s484_s1 = int_to_ptr.vmem [resolvable:$true] %s483_s1 }
   0x7   :  { %v23_v7 = vsel %vm22_vm1, %v21_v6, %v16_v5  ;;  %v565_v47 = vmov 1326507024   ;;  %s537_s15 = scalar_lea.vmem %s484_s1, 512  ;;  %p542_p1 = scmp.lt.s32.totalorder %s484_s1, %s484_s1 }
   0x8   :  { %p538_p0 = scmp.ne.s32.totalorder %s484_s1, %s537_s15  ;;  %p543_p2 = scmp.lt.s32.totalorder %s537_s15, %s537_s15 }
   0xa   :  { %p544_p3 = por %p543_p2, %p542_p1 }
   0xc   :  { %p545_p4 = pnand %p544_p3, %p538_p0 }
  0x7d   :  { %v31_v9 = vpop.permute.xlu0 %30 }
  0x7e   :  { %v600_v10 = vmul.f32 %v31_v9, %v23_v7 }
  0x80   :  { %v40_v12 = vand.u32 2147483647, %v600_v10  ;;  %v43_v13 = vand.u32 2139095040, %v600_v10  ;;  %vm42_vm2 = vcmp.lt.s32.totalorder %v600_v10, 0 }
  0x81   :  { %v36_v14 = vpop.permute.xlu0 %35 }
  0x82   :  { %v44_v15 = vshrl.u32 %v43_v13, 23  ;;  %v604_v16 = vmul.f32 %v36_v14, %v25_v11  ;;  %v47_v17 = vand.u32 8388607, %v40_v12 }
  0x84   :  { %v494_v18 = vadd.s32 4294967169, %v44_v15  ;;  %v147_v19 = vand.u32 2139095040, %v604_v16  ;;  %v48_v21 = vor.u32 8388608, %v47_v17  ;;  %v144_v23 = vand.u32 2147483647, %v604_v16 }
  0x86   :  { %v50_v20 = vadd.s32 1, %v494_v18  ;;  %v148_v22 = vshrl.u32 %v147_v19, 23  ;;  %v610_v28 = vshll.u32 %v48_v21, 8  ;;  %v151_v32 = vand.u32 8388607, %v144_v23 }
  0x88   :  { %vm51_vm3 = vcmp.gt.s32.totalorder %v50_v20, 0  ;;  %v498_v25 = vadd.s32 4294967169, %v148_v22  ;;  %v152_v62 = vor.u32 8388608, %v151_v32 }
  0x89   :  { %v52_v24 = vsel %vm51_vm3, %v50_v20, 0  ;;  %vm41_vm3 = vcmp.le.f32.partialorder %v40_v12, 0.7853982 }
  0x8a   :  { %v53_v26 = vshrl.u32 %v52_v24, 5  ;;  %v54_v27 = vand.u32 31, %v52_v24  ;;  %v154_v33 = vadd.s32 1, %v498_v25  ;;  %v192_v14 = vshll.u32 %v152_v62, 8 }
  0x8c   :  { %v55_v29 = vsub.s32 32, %v54_v27  ;;  %v57_v31 = vshll.u32 %v560_v30, %v54_v27  ;;  %v60_v35 = vshll.u32 %v561_v34, %v54_v27  ;;  %v63_v37 = vshll.u32 %v562_v36, %v54_v27 }
  0x8d   :  { %v66_v39 = vshll.u32 %v563_v38, %v54_v27  ;;  %v69_v41 = vshll.u32 %v564_v40, %v54_v27  ;;  %vm72_vm4 = vcmp.lt.s32.totalorder %v53_v26, 1  ;;  %vm74_vm5 = vcmp.lt.s32.totalorder %v53_v26, 3 }
  0x8e   :  { %v58_v42 = vshrl.u32 %v561_v34, %v55_v29  ;;  %v61_v43 = vshrl.u32 %v562_v36, %v55_v29  ;;  %v64_v44 = vshrl.u32 %v563_v38, %v55_v29  ;;  %v56_v45 = vshrl.u32 %v560_v30, %v55_v29 }
  0x8f   :  { %v67_v46 = vshrl.u32 %v564_v40, %v55_v29  ;;  %v70_v48 = vshrl.u32 %v565_v47, %v55_v29  ;;  %vm155_vm6 = vcmp.gt.s32.totalorder %v154_v33, 0  ;;  %vm75_vm7 = vcmp.lt.s32.totalorder %v53_v26, 4 }
  0x90   :  { %v59_v49 = vor.u32 %v58_v42, %v57_v31  ;;  %v62_v50 = vor.u32 %v61_v43, %v60_v35  ;;  %v65_v51 = vor.u32 %v64_v44, %v63_v37  ;;  %v156_v54 = vsel %vm155_vm6, %v154_v33, 0 }
  0x91   :  { %v68_v52 = vor.u32 %v67_v46, %v66_v39  ;;  %v71_v53 = vor.u32 %v70_v48, %v69_v41  ;;  %vm73_vm8 = vcmp.lt.s32.totalorder %v53_v26, 2  ;;  %v158_v1 = vand.u32 31, %v156_v54 }
  0x92   :  { %v76_v55 = vsel %vm72_vm4, %v56_v45, %v59_v49  ;;  %v77_v56 = vsel %vm75_vm7, %v65_v51, 2102212464  ;;  %v80_v57 = vsel %vm72_vm4, %v59_v49, %v62_v50  ;;  %v84_v58 = vsel %vm72_vm4, %v62_v50, %v65_v51 }
  0x93   :  { %v78_v59 = vsel %vm74_vm5, %v62_v50, %v77_v56  ;;  %v81_v60 = vsel %vm75_vm7, %v68_v52, 920167782  ;;  %v85_v61 = vsel %vm75_vm7, %v71_v53, 1326507024  ;;  %v157_v11 = vshrl.u32 %v156_v54, 5 }
  0x94   :  { %v82_v63 = vsel %vm74_vm5, %v65_v51, %v81_v60  ;;  %v86_v0 = vsel %vm74_vm5, %v68_v52, %v85_v61  ;;  %v79_v2 = vsel %vm73_vm8, %v76_v55, %v78_v59  ;;  %v159_v13 = vsub.s32 32, %v158_v1 }
  0x95   :  { %v83_v4 = vsel %vm73_vm8, %v80_v57, %v82_v63  ;;  %v87_v5 = vsel %vm73_vm8, %v84_v58, %v86_v0  ;;  %v95_v15 = vmul.u32 %v610_v28, %v79_v2  ;;  %v161_v17 = vshll.u32 %v560_v30, %v158_v1 }
  0x96   :  { %v623_v6 = vmul.u32.u64.low %v610_v28, %v87_v5  ;;  %v624_v7 = vmul.u32.u64.high %v610_v28, %v87_v5, %v623_v6  ;;  %v627_v8 = vmul.u32.u64.low %v610_v28, %v83_v4  ;;  %v628_v9 = vmul.u32.u64.high %v610_v28, %v83_v4, %v627_v8 }
  0x97   :  { %v164_v18 = vshll.u32 %v561_v34, %v158_v1  ;;  %v167_v19 = vshll.u32 %v562_v36, %v158_v1  ;;  %v162_v20 = vshrl.u32 %v561_v34, %v159_v13  ;;  %v165_v21 = vshrl.u32 %v562_v36, %v159_v13 }
  0x98   :  { %v168_v22 = vshrl.u32 %v563_v38, %v159_v13  ;;  %v170_v24 = vshll.u32 %v563_v38, %v158_v1  ;;  %vm97_vm9 = vc.u32 %v624_v7, %v627_v8  ;;  %v98_v25 = vadd.s32 1, %v628_v9 }
  0x99   :  { %v171_v26 = vshrl.u32 %v564_v40, %v159_v13  ;;  %v173_v27 = vshll.u32 %v564_v40, %v158_v1  ;;  %v163_v29 = vor.u32 %v162_v20, %v161_v17  ;;  %v166_v31 = vor.u32 %v165_v21, %v164_v18 }
  0x9a   :  { %v169_v32 = vor.u32 %v168_v22, %v167_v19  ;;  %v174_v33 = vshrl.u32 %v565_v47, %v159_v13  ;;  %v99_v28 = vsel %vm97_vm9, %v98_v25, %v628_v9  ;;  %vm176_vm10 = vcmp.lt.s32.totalorder %v157_v11, 1 }
  0x9b   :  { %v172_v35 = vor.u32 %v171_v26, %v170_v24  ;;  %vm179_vm11 = vcmp.lt.s32.totalorder %v157_v11, 4  ;;  %v100_v34 = vadd.s32 %v99_v28, %v95_v15  ;;  %vm178_vm12 = vcmp.lt.s32.totalorder %v157_v11, 3 }
  0x9c   :  { %v175_v36 = vor.u32 %v174_v33, %v173_v27  ;;  %v181_v37 = vsel %vm179_vm11, %v169_v32, 2102212464  ;;  %v160_v38 = vshrl.u32 %v560_v30, %v159_v13  ;;  %v184_v39 = vsel %vm176_vm10, %v163_v29, %v166_v31 }
  0x9d   :  { %v185_v41 = vsel %vm179_vm11, %v172_v35, 920167782  ;;  %v188_v42 = vsel %vm176_vm10, %v166_v31, %v169_v32  ;;  %v101_v43 = vadd.s32 536870912, %v100_v34  ;;  %vm177_vm13 = vcmp.lt.s32.totalorder %v157_v11, 2 }
  0x9e   :  { %v186_v40 = vsel %vm178_vm12, %v169_v32, %v185_v41  ;;  %v189_v44 = vsel %vm179_vm11, %v175_v36, 1326507024  ;;  %v180_v45 = vsel %vm176_vm10, %v160_v38, %v163_v29  ;;  %v182_v46 = vsel %vm178_vm12, %v166_v31, %v181_v37 }
  0x9f   :  { %v187_v47 = vsel %vm177_vm13, %v184_v39, %v186_v40  ;;  %v190_v48 = vsel %vm178_vm12, %v172_v35, %v189_v44  ;;  %v102_v49 = vshrl.u32 %v101_v43, 30  ;;  %v183_v55 = vsel %vm177_vm13, %v180_v45, %v182_v46 }
  0xa0   :  { %v191_v50 = vsel %vm177_vm13, %v188_v42, %v190_v48  ;;  %v638_v51 = vmul.u32.u64.low %v192_v14, %v187_v47  ;;  %v639_v52 = vmul.u32.u64.high %v192_v14, %v187_v47, %v638_v51  ;;  %v199_v58 = vmul.u32 %v192_v14, %v183_v55 }
  0xa1   :  { %v641_v53 = vmul.u32.u64.low %v192_v14, %v191_v50  ;;  %v642_v54 = vmul.u32.u64.high %v192_v14, %v191_v50, %v641_v53  ;;  %v103_v30 = vshll.u32 %v102_v49, 30  ;;  %v96_v9 = vadd.s32 %v627_v8, %v624_v7 }
  0xa2   :  { %v202_v57 = vadd.s32 1, %v639_v52  ;;  %v126_v28 = vsub.s32 4, %v102_v49  ;;  %vm146_vm4 = vcmp.lt.s32.totalorder %v604_v16, 0  ;;  %vm145_vm5 = vcmp.le.f32.partialorder %v144_v23, 0.7853982 }
  0xa3   :  { %v104_v56 = vsub.s32 %v100_v34, %v103_v30  ;;  %vm201_vm14 = vc.u32 %v642_v54, %v638_v51  ;;  %v200_v32 = vadd.s32 %v638_v51, %v642_v54  ;;  %vm132_vm9 = vweird.f32 %v600_v10 }
  0xa4   :  { %v203_v60 = vsel %vm201_vm14, %v202_v57, %v639_v52  ;;  %v127_v42 = vsel %vm42_vm2, %v126_v28, %v102_v49  ;;  %vm472_vm10 = vcmask 523264  }
  0xa5   :  { %v106_v59 = vsub.s32 0, %v104_v56  ;;  %v204_v61 = vadd.s32 %v203_v60, %v199_v58  ;;  %v129_v45 = vsel %vm41_vm3, 0, %v127_v42 }
  0xa6   :  { %v133_v47 = vadd.s32 3, %v129_v45 }
  0xa7   :  { %v495_v62 = vmin.u32 %v106_v59, %v104_v56  ;;  %v205_v63 = vadd.s32 536870912, %v204_v61  ;;  %v341_v59 = vand.u32 3, %v129_v45 }
  0xa8   :  { %v134_v52 = vand.u32 3, %v133_v47 }
  0xa9   :  { %v108_v0 = vclz %v495_v62  ;;  %v206_v1 = vshrl.u32 %v205_v63, 30  ;;  %vm343_vm11 = vcmp.eq.s32.totalorder %v341_v59, 0  ;;  %vm346_vm12 = vcmp.eq.s32.totalorder %v341_v59, 2 }
  0xaa   :  { %vm139_vm6 = vcmp.eq.s32.totalorder %v134_v52, 2  ;;  %vm136_vm7 = vcmp.eq.s32.totalorder %v134_v52, 0  ;;  %vm135_vm8 = vcmp.lt.s32.totalorder %v134_v52, 2  ;;  %vm342_vm13 = vcmp.lt.s32.totalorder %v341_v59, 2 }
  0xab   :  { %v496_v2 = vadd.s32 4294967294, %v108_v0  ;;  %v207_v4 = vshll.u32 %v206_v1, 30  ;;  %v230_v50 = vsub.s32 4, %v206_v1 }
  0xad   :  { %vm497_vm15 = vcmp.lt.s32.totalorder %v496_v2, 0  ;;  %v208_v6 = vsub.s32 %v204_v61, %v207_v4  ;;  %v231_v49 = vsel %vm146_vm4, %v230_v50, %v206_v1 }
  0xae   :  { %v111_v5 = vsel %vm497_vm15, 0, %v496_v2 }
  0xaf   :  { %v112_v11 = vsub.s32 32, %v111_v5  ;;  %v116_v13 = vsub.s32 4294967266, %v111_v5  ;;  %v210_v14 = vsub.s32 0, %v208_v6  ;;  %v113_v15 = vshll.u32 %v104_v56, %v111_v5 }
  0xb0   :  { %v233_v56 = vsel %vm145_vm5, 0, %v231_v49 }
  0xb1   :  { %v114_v17 = vshrl.u32 %v96_v9, %v112_v11  ;;  %v117_v18 = vadd.s32 127, %v116_v13  ;;  %v499_v19 = vmin.u32 %v210_v14, %v208_v6  ;;  %v237_v60 = vadd.s32 3, %v233_v56 }
  0xb2   :  { %v444_v63 = vand.u32 3, %v233_v56 }
  0xb3   :  { %v115_v20 = vor.u32 %v114_v17, %v113_v15  ;;  %v118_v21 = vshll.u32 %v117_v18, 23  ;;  %v212_v22 = vclz %v499_v19  ;;  %v238_v4 = vand.u32 3, %v237_v60 }
  0xb4   :  { %vm445_vm15 = vcmp.lt.s32.totalorder %v444_v63, 2 }
  0xb5   :  { %v119_v24 = vor.u32 4788187, %v118_v21  ;;  %v500_v25 = vadd.s32 4294967294, %v212_v22  ;;  %v122_v27 = vcvt.s32.f32 %v115_v20  ;;  %vm243_vm14 = vcmp.eq.s32.totalorder %v238_v4, 2 }
  0xb7   :  { %v120_v26 = vand.u32 2147483647, %v119_v24  ;;  %vm501_vm1 = vcmp.lt.s32.totalorder %v500_v25, 0 }
  0xb8   :  { %v215_v31 = vsel %vm501_vm1, 0, %v500_v25  ;;  %vm449_vm1 = vcmp.eq.s32.totalorder %v444_v63, 2 }
  0xb9   :  { %v123_v29 = vmul.f32 %v122_v27, %v120_v26  ;;  %v216_v7 = vsub.s32 32, %v215_v31  ;;  %v220_v8 = vsub.s32 4294967266, %v215_v31  ;;  %v217_v35 = vshll.u32 %v208_v6, %v215_v31 }
  0xbb   :  { %v124_v33 = vxor.u32 2147483648, %v123_v29  ;;  %v218_v34 = vshrl.u32 %v200_v32, %v216_v7  ;;  %v221_v36 = vadd.s32 127, %v220_v8 }
  0xbd   :  { %v125_v37 = vsel %vm42_vm2, %v124_v33, %v123_v29  ;;  %v219_v39 = vor.u32 %v218_v34, %v217_v35  ;;  %v222_v41 = vshll.u32 %v221_v36, 23  ;;  %vm240_vm2 = vcmp.eq.s32.totalorder %v238_v4, 0 }
  0xbe   :  { %v128_v38 = vsel %vm41_vm3, %v600_v10, %v125_v37  ;;  %vm446_vm3 = vcmp.eq.s32.totalorder %v444_v63, 0 }
  0xbf   :  { %529 = vcosq.f32 %v128_v38  ;;  %v223_v43 = vor.u32 4788187, %v222_v41  ;;  %v226_v44 = vcvt.s32.f32 %v219_v39 }
  0xc0   :  { %531 = vsinq.f32 %v128_v38 }
  0xc1   :  { %v224_v40 = vand.u32 2147483647, %v223_v43 }
  0xc3   :  { %v227_v46 = vmul.f32 %v226_v44, %v224_v40 }
  0xc5   :  { %v228_v48 = vxor.u32 2147483648, %v227_v46 }
  0xc7   :  { %v229_v12 = vsel %vm146_vm4, %v228_v48, %v227_v46  ;;  %vm239_vm4 = vcmp.lt.s32.totalorder %v238_v4, 2 }
  0xc8   :  { %v232_v51 = vsel %vm145_vm5, %v604_v16, %v229_v12  ;;  %vm236_vm5 = vweird.f32 %v604_v16 }
  0xc9   :  { %533 = vcosq.f32 %v232_v51 }
  0xca   :  { %535 = vsinq.f32 %v232_v51 }
  0xcc   :  { %v530_v53 = vpop.eup %529 }
  0xcd   :  { %v532_v54 = vpop.eup %531  ;;  %v140_v30 = vxor.u32 2147483648, %v530_v53 }
  0xce   :  { %v137_v55 = vxor.u32 2147483648, %v532_v54 }
  0xcf   :  { %v141_v57 = vsel %vm139_vm6, %v140_v30, %v532_v54  ;;  %v348_v1 = vsel %vm346_vm12, %v140_v30, %v532_v54  ;;  %vm463_vm6 = vcmask 1046528  }
  0xd0   :  { %v138_v58 = vsel %vm136_vm7, %v530_v53, %v137_v55  ;;  %v345_v0 = vsel %vm343_vm11, %v530_v53, %v137_v55  ;;  %vm476_vm7 = vcmask 518144  }
  0xd1   :  { %v142_v23 = vsel %vm135_vm8, %v138_v58, %v141_v57  ;;  %v349_v9 = vsel %vm342_vm13, %v345_v0, %v348_v1 }
  0xd2   :  { %v143_v61 = vsel %vm132_vm9, nan, %v142_v23  ;;  %v350_v17 = vsel %vm132_vm9, nan, %v349_v9 }
  0xd3   :  { %v456_v62 = vrot.slane %v143_v61, 5  ;;  %v464_v24 = vrot.slane %v350_v17, 1 }
  0xd5   :  { %v470_v2 = vsel %vm20_vm0, %v593_v3, %v456_v62 }
  0xd6   :  { %473 = vst.msk [vmem:[#allocation2] sm:$0xff] %vm472_vm10, %v470_v2  ;;  %v534_v5 = vpop.eup %533 }
  0xd7   :  { %v536_v6 = vpop.eup %535  ;;  %v244_v11 = vxor.u32 2147483648, %v534_v5 }
  0xd8   :  { %v241_v13 = vxor.u32 2147483648, %v536_v6 }
  0xd9   :  { %v245_v14 = vsel %vm243_vm14, %v244_v11, %v536_v6  ;;  %v451_v15 = vsel %vm449_vm1, %v244_v11, %v536_v6 }
  0xda   :  { %v242_v3 = vsel %vm240_vm2, %v534_v5, %v241_v13  ;;  %v448_v18 = vsel %vm446_vm3, %v534_v5, %v241_v13 }
  0xdb   :  { %v246_v19 = vsel %vm239_vm4, %v242_v3, %v245_v14  ;;  %v452_v20 = vsel %vm445_vm15, %v448_v18, %v451_v15 }
  0xdc   :  { %v247_v21 = vsel %vm236_vm5, nan, %v246_v19  ;;  %v453_v22 = vsel %vm236_vm5, nan, %v452_v20 }
  0xdd   :  { %v457_v25 = vrot.slane %v247_v21, 5  ;;  %v465_v26 = vrot.slane %v453_v22, 1 }
  0xdf   :  { %v458_v27 = vsel %vm20_vm0, %v456_v62, %v457_v25  ;;  %v466_v10 = vsel %vm463_vm6, %v464_v24, %v465_v26  ;;  %477 = vst.msk [vmem:[#allocation2 + $0x18] sm:$0x7] %vm476_vm7, %v465_v26 }
  0xe0   :  { %v471_v29 = vsel %vm463_vm6, %v458_v27, %v464_v24  ;;  %475 = vst.msk [vmem:[#allocation2 + $0x10] sm:$0xff] %vm472_vm10, %v466_v10 }
  0xe1   :  { %474 = vst.msk [vmem:[#allocation2 + $0x8] sm:$0xff] %vm472_vm10, %v471_v29 }
  0xe2   :  { %548 = shalt.err (!%p545_p4)
}
  0xe3   :  { %s567_s16 = smov 128   ;;  %s568_s17 = smov 8  }
  0xe4   :  { %489 = dma.vmem_to_hbm [thread:$0]  %s484_s1, 512, %s675_s2, [#allocation3], %s567_s16, %s567_s16, %s568_s17  }
  0xe5   :  { %557 = dma.done.wait [#allocation3], 512  }
  0xe6   :  { %558 = vsyncadd [#allocation3], 4294966784 }
  0xe7   :  { %493 = vsyncpa [#allocation3], 1 }

</bundles_post_ra>
